<compile_context>
chip_gen: v7x
topology: tpu7x:2x2x1
jax: 0.10.0
libtpu: 0.0.40
codegen_flags: <defaults>
</compile_context>

<pallas_src>
import functools

import jax
import jax.numpy as jnp
from jax.experimental import pallas as pl
from jax.experimental.pallas import tpu as pltpu

_LANE = 128   # lane width (last dim alignment)
_SUBLANE = 8  # sublane width (second-to-last dim alignment)


def _round_up(x: int, m: int) -> int:
    return ((x + m - 1) // m) * m


def _itemsize(dt) -> int:
    return jnp.dtype(dt).itemsize


def _vmem_budget_bytes() -> int:
    """~75% of physical VMEM; the default *scoped* limit (16/32 MiB) is far
    below physical (128 MiB v5e/v6e, 64 MiB v7x), so we raise it explicitly."""
    try:
        cap = int(pltpu.get_tpu_info().vmem_capacity_bytes)
    except Exception:  # off-TPU tracing / older jax: assume smallest (v7x)
        cap = 64 << 20
    return (cap * 3) // 4


def _vae_kernel(x_ref, w_ref, b_ref, eps_ref, mu_ref, lv_ref, z_ref):
    """One batch tile.

    x_ref:   (TILE_B, Dp)   input rows (feature dim lane-padded to Dp)
    w_ref:   (Dp, 2*Lp)     fused [W1 | W2] (pre-transposed, lane-padded)
    b_ref:   (1, 2*Lp)      fused [b1 | b2] (f32)
    eps_ref: (TILE_B, Lp)   N(0,1) noise
    mu_ref / lv_ref / z_ref: (TILE_B, Lp) separate lane-dense outputs
    """
    lp = eps_ref.shape[-1]

    # Single fused matmul for both heads; f32 accumulation on the MXU.
    y = jnp.dot(x_ref[...], w_ref[...],
                preferred_element_type=jnp.float32) + b_ref[...]

    mu = y[:, :lp]            # 128-lane-aligned slices (no relayout)
    log_var = y[:, lp:]

    # Reparameterization: z = eps * exp(0.5 * log_var) + mu  (exp -> EUP slot)
    std = jnp.exp(0.5 * log_var)
    z = eps_ref[...].astype(jnp.float32) * std + mu

    # Three full-lane unmasked stores (Lp is a multiple of 128).
    mu_ref[...] = mu.astype(mu_ref.dtype)
    lv_ref[...] = log_var.astype(lv_ref.dtype)
    z_ref[...] = z.astype(z_ref.dtype)


@functools.partial(jax.jit,
                   static_argnames=("tile_b", "compute_dtype", "out_dtype"))
def vae_forward(x, w1, b1, w2, b2, eps, *, tile_b=1024,
                compute_dtype=None, out_dtype=jnp.float32):
    """x: (B, in_dim); w*: (in_dim, latent_dim) (nn.Linear weights pre-transposed);
    b*: (1, latent_dim) or (latent_dim,); eps: (B, latent_dim) ~ N(0,1).
    Returns (mu, log_var, z), each (B, latent_dim) in out_dtype."""
    B, in_dim = x.shape
    L = w1.shape[1]
    f32 = jnp.float32
    cdt = f32 if compute_dtype is None else compute_dtype

    # Lane-align feature dims; sublane-align batch.
    Lp = _round_up(L, _LANE)
    Dp = _round_up(in_dim, _LANE)
    B8 = _round_up(B, _SUBLANE)

    # ---- VMEM-budgeted batch tile ------------------------------------------
    budget = _vmem_budget_bytes()
    weight_bytes = 2 * (Dp * 2 * Lp * _itemsize(cdt)) + 2 * (2 * Lp * 4)
    row_bytes = 2 * (Dp * _itemsize(cdt)                # x (double-buffered)
                     + Lp * _itemsize(eps.dtype)        # eps
                     + 3 * Lp * _itemsize(out_dtype))   # mu / log_var / z
    tile_cap = max(_SUBLANE,
                   ((budget - weight_bytes) // max(row_bytes, 1))
                   // _SUBLANE * _SUBLANE)
    tile_b = min(tile_b, tile_cap, B8)
    # >= 2 grid steps whenever possible (v7x: shard batch across 2 TCs) and a
    # tile size ~= ceil(B/n_tiles) so dead zero-row padding is only a few rows.
    n_tiles = max(pl.cdiv(B8, tile_b), 2 if B8 >= 2 * _SUBLANE else 1)
    tile_b = _round_up(pl.cdiv(B8, n_tiles), _SUBLANE)
    n_tiles = pl.cdiv(B8, tile_b)
    Bp = tile_b * n_tiles

    # ---- Fused, lane-padded weight [W1 | W2] and bias [b1 | b2] (tiny) ------
    # TODO(synk): for very large in_dim (weight approaching tens of MiB on
    # v7x's 64 MiB VMEM), add a K grid axis marked "arbitrary" with a VMEM
    # f32 accumulator instead of holding the whole K in one block.
    wc = jnp.zeros((Dp, 2 * Lp), f32)
    wc = wc.at[:in_dim, :L].set(w1.astype(f32))
    wc = wc.at[:in_dim, Lp:Lp + L].set(w2.astype(f32))
    wc = wc.astype(cdt)
    bc = jnp.zeros((1, 2 * Lp), f32)
    bc = bc.at[:, :L].set(b1.reshape(1, -1).astype(f32))
    bc = bc.at[:, Lp:Lp + L].set(b2.reshape(1, -1).astype(f32))

    # ---- Streamed operands: pad only if actually required -------------------
    if (Bp, Dp) != (B, in_dim):
        x_p = jnp.zeros((Bp, Dp), cdt).at[:B, :in_dim].set(x.astype(cdt))
    else:
        x_p = x.astype(cdt)          # identity when already cdt
    if (Bp, Lp) != (B, L):
        eps_p = jnp.zeros((Bp, Lp), eps.dtype).at[:B, :L].set(eps)
    else:
        eps_p = eps

    lat_spec = pl.BlockSpec((tile_b, Lp), lambda i: (i, 0))
    out_struct = jax.ShapeDtypeStruct((Bp, Lp), out_dtype)

    mu, log_var, z = pl.pallas_call(
        _vae_kernel,
        out_shape=(out_struct, out_struct, out_struct),
        grid=(n_tiles,),
        in_specs=[
            # Streamed per-tile operands (double-buffered by Pallas).
            pl.BlockSpec((tile_b, Dp), lambda i: (i, 0)),
            # Constant block index -> weight/bias stay VMEM-resident across
            # grid steps (no re-DMA).
            # TODO(synk): pipeline_mode=pl.Buffered(1) here would also drop the
            # unused second weight buffer (VMEM headroom on v7x).
            pl.BlockSpec((Dp, 2 * Lp), lambda i: (0, 0)),
            pl.BlockSpec((1, 2 * Lp), lambda i: (0, 0)),
            lat_spec,                                   # eps
        ],
        out_specs=[lat_spec, lat_spec, lat_spec],
        compiler_params=pltpu.CompilerParams(
            # Batch tiles are independent -> shard across TCs on v7x.
            dimension_semantics=("parallel",),
            vmem_limit_bytes=int(budget),
        ),
    )(x_p, wc, bc, eps_p)

    # Strip padding (skipped entirely for aligned shapes).
    if (Bp, Lp) != (B, L):
        mu, log_var, z = mu[:B, :L], log_var[:B, :L], z[:B, :L]
    return mu, log_var, z


def vae_forward_ref(x, w1, b1, w2, b2, eps):
    mu = x @ w1 + b1
    log_var = x @ w2 + b2
    std = jnp.exp(0.5 * log_var)
    z = eps * std + mu
    return mu, log_var, z


if __name__ == "__main__":
    key = jax.random.PRNGKey(0)
    k_x, k_w1, k_b1, k_w2, k_b2, k_eps = jax.random.split(key, 6)

    B, in_dim, latent_dim = 8, 32, 16

    x = jax.random.normal(k_x, (B, in_dim), dtype=jnp.float32)
    # nn.Linear-style uniform(-1/sqrt(in_dim), 1/sqrt(in_dim)) init.
    bound = 1.0 / (in_dim ** 0.5)
    w1 = jax.random.uniform(k_w1, (in_dim, latent_dim), minval=-bound, maxval=bound)
    b1 = jax.random.uniform(k_b1, (1, latent_dim), minval=-bound, maxval=bound)
    w2 = jax.random.uniform(k_w2, (in_dim, latent_dim), minval=-bound, maxval=bound)
    b2 = jax.random.uniform(k_b2, (1, latent_dim), minval=-bound, maxval=bound)
    # eps ~ N(0,1) (torch.randn_like) drawn outside so the kernel stays a pure
    # function matching the reference.
    # TODO(synk): optionally draw eps in-kernel via pltpu.prng_seed +
    # pltpu.prng_random_bits to remove the eps HBM read (changes RNG stream).
    eps = jax.random.normal(k_eps, (B, latent_dim), dtype=jnp.float32)

    mu, log_var, z = vae_forward(x, w1, b1, w2, b2, eps)
    jax.block_until_ready((mu, log_var, z))

    mu_r, lv_r, z_r = vae_forward_ref(x, w1, b1, w2, b2, eps)
    assert jnp.allclose(mu, mu_r, atol=1e-5, rtol=1e-5)
    assert jnp.allclose(log_var, lv_r, atol=1e-5, rtol=1e-5)
    assert jnp.allclose(z, z_r, atol=1e-5, rtol=1e-5)

    print("KERNEL_OK")
</pallas_src>

<mosaic_0001>
module attributes {stable_mosaic.version = 11 : i64} {
  func.func @_vae_kernel(%arg0: i32, %arg1: memref<8x128xf32, #tpu.memory_space<vmem>>, %arg2: memref<128x256xf32, #tpu.memory_space<vmem>>, %arg3: memref<1x256xf32, #tpu.memory_space<vmem>>, %arg4: memref<8x128xf32, #tpu.memory_space<vmem>>, %arg5: memref<8x128xf32, #tpu.memory_space<vmem>>, %arg6: memref<8x128xf32, #tpu.memory_space<vmem>>, %arg7: memref<8x128xf32, #tpu.memory_space<vmem>>) attributes {dimension_semantics = [#tpu.dimension_semantics<parallel>], iteration_bounds = array<i64: 1>, scalar_prefetch = 0 : i64, scratch_operands = 0 : i64, tpu.core_type = #tpu.core_type<tc>, window_params = [{transform_indices = @transform_0, window_bounds = array<i64: 8, 128>}, {pipeline_mode = #tpu.pipeline_mode<synchronous>, transform_indices = @transform_1, window_bounds = array<i64: 128, 256>}, {pipeline_mode = #tpu.pipeline_mode<synchronous>, transform_indices = @transform_2, window_bounds = array<i64: 1, 256>}, {transform_indices = @transform_3, window_bounds = array<i64: 8, 128>}, {transform_indices = @transform_4, window_bounds = array<i64: 8, 128>}, {transform_indices = @transform_5, window_bounds = array<i64: 8, 128>}, {transform_indices = @transform_6, window_bounds = array<i64: 8, 128>}]} {
    %c0 = arith.constant 0 : index
    %c0_0 = arith.constant 0 : index
    %0 = vector.load %arg1[%c0, %c0_0] : memref<8x128xf32, #tpu.memory_space<vmem>>, vector<8x128xf32>
    %c0_1 = arith.constant 0 : index
    %c0_2 = arith.constant 0 : index
    %1 = vector.load %arg2[%c0_1, %c0_2] : memref<128x256xf32, #tpu.memory_space<vmem>>, vector<128x256xf32>
    %cst = arith.constant dense<0.000000e+00> : vector<8x256xf32>
    %2 = tpu.matmul %0, %1, %cst {dimension_numbers = #tpu.dot_dimension_numbers<[1], [0], [0], [1], [0, 0, 1, 1], [], []>} : vector<8x128xf32>, vector<128x256xf32>, vector<8x256xf32> -> vector<8x256xf32>
    %c0_3 = arith.constant 0 : index
    %c0_4 = arith.constant 0 : index
    %3 = vector.load %arg3[%c0_3, %c0_4] : memref<1x256xf32, #tpu.memory_space<vmem>>, vector<1x256xf32>
    %4 = vector.broadcast %3 : vector<1x256xf32> to vector<8x256xf32>
    %5 = arith.addf %2, %4 : vector<8x256xf32>
    %6 = vector.extract_strided_slice %5 {offsets = [0, 0], sizes = [8, 128], strides = [1, 1]} : vector<8x256xf32> to vector<8x128xf32>
    %7 = vector.extract_strided_slice %5 {offsets = [0, 128], sizes = [8, 128], strides = [1, 1]} : vector<8x256xf32> to vector<8x128xf32>
    %cst_5 = arith.constant 5.000000e-01 : f32
    %8 = vector.broadcast %cst_5 : f32 to vector<8x128xf32>
    %9 = arith.mulf %8, %7 : vector<8x128xf32>
    %10 = math.exp %9 : vector<8x128xf32>
    %c0_6 = arith.constant 0 : index
    %c0_7 = arith.constant 0 : index
    %11 = vector.load %arg4[%c0_6, %c0_7] : memref<8x128xf32, #tpu.memory_space<vmem>>, vector<8x128xf32>
    %12 = arith.mulf %11, %10 : vector<8x128xf32>
    %13 = arith.addf %12, %6 : vector<8x128xf32>
    %c0_8 = arith.constant 0 : index
    %c0_9 = arith.constant 0 : index
    %14 = vector.load %arg5[%c0_8, %c0_9] : memref<8x128xf32, #tpu.memory_space<vmem>>, vector<8x128xf32>
    tpu.vector_store %arg5[%c0_8, %c0_9], %6 {strides = array<i32>} : memref<8x128xf32, #tpu.memory_space<vmem>>, vector<8x128xf32>,
    %c0_10 = arith.constant 0 : index
    %c0_11 = arith.constant 0 : index
    %15 = vector.load %arg6[%c0_10, %c0_11] : memref<8x128xf32, #tpu.memory_space<vmem>>, vector<8x128xf32>
    tpu.vector_store %arg6[%c0_10, %c0_11], %7 {strides = array<i32>} : memref<8x128xf32, #tpu.memory_space<vmem>>, vector<8x128xf32>,
    %c0_12 = arith.constant 0 : index
    %c0_13 = arith.constant 0 : index
    %16 = vector.load %arg7[%c0_12, %c0_13] : memref<8x128xf32, #tpu.memory_space<vmem>>, vector<8x128xf32>
    tpu.vector_store %arg7[%c0_12, %c0_13], %13 {strides = array<i32>} : memref<8x128xf32, #tpu.memory_space<vmem>>, vector<8x128xf32>,
    return
  }
  func.func @transform_0(%arg0: i32) -> (i32, i32) {
    %c0_i32 = arith.constant 0 : i32
    %c0_i32_0 = arith.constant 0 : i32
    return %arg0, %c0_i32 : i32, i32
  }
  func.func @transform_1(%arg0: i32) -> (i32, i32) {
    %c0_i32 = arith.constant 0 : i32
    %c0_i32_0 = arith.constant 0 : i32
    %c0_i32_1 = arith.constant 0 : i32
    return %c0_i32, %c0_i32_0 : i32, i32
  }
  func.func @transform_2(%arg0: i32) -> (i32, i32) {
    %c0_i32 = arith.constant 0 : i32
    %c0_i32_0 = arith.constant 0 : i32
    %c0_i32_1 = arith.constant 0 : i32
    return %c0_i32, %c0_i32_0 : i32, i32
  }
  func.func @transform_3(%arg0: i32) -> (i32, i32) {
    %c0_i32 = arith.constant 0 : i32
    %c0_i32_0 = arith.constant 0 : i32
    return %arg0, %c0_i32 : i32, i32
  }
  func.func @transform_4(%arg0: i32) -> (i32, i32) {
    %c0_i32 = arith.constant 0 : i32
    %c0_i32_0 = arith.constant 0 : i32
    return %arg0, %c0_i32 : i32, i32
  }
  func.func @transform_5(%arg0: i32) -> (i32, i32) {
    %c0_i32 = arith.constant 0 : i32
    %c0_i32_0 = arith.constant 0 : i32
    return %arg0, %c0_i32 : i32, i32
  }
  func.func @transform_6(%arg0: i32) -> (i32, i32) {
    %c0_i32 = arith.constant 0 : i32
    %c0_i32_0 = arith.constant 0 : i32
    return %arg0, %c0_i32 : i32, i32
  }
}

</mosaic_0001>

<bundles_post_ra>
// kernel: vae_forward.1
= control target key start
LH: loop header
LB: loop body
LE: loop exit
PB: predicated region body
PF: predicated region fallthrough
CT: control target
= control target key end

     0   :  { %12 = vsyncpa [#allocation3], 0  ;;  %v296_v7 = vmov 0.0   ;;  %s483_s0 = inlined_call_operand.vmem [shape: f32[8,128], index: 0, kind: input, shape index: {}]   ;;  %s484_s1 = inlined_call_operand.vmem [shape: f32[128,256], index: 1, kind: input, shape index: {}]   ;;  %s485_s2 = inlined_call_operand.vmem [shape: f32[1,256], index: 2, kind: input, shape index: {}]   ;;  %s486_s3 = inlined_call_operand.vmem [shape: f32[8,128], index: 3, kind: input, shape index: {}]   ;;  %s487_s4 = inlined_call_operand.hbm [shape: f32[8,128], index: 4, kind: output, shape index: {0}]   ;;  %s488_s5 = inlined_call_operand.hbm [shape: f32[8,128], index: 5, kind: output, shape index: {1}]   ;;  %s489_s6 = inlined_call_operand.hbm [shape: f32[8,128], index: 6, kind: output, shape index: {2}]  }
   0x1   :  { %v24_v0 = vld [vmem:[%s484_s1 + $0x8] sm:$0xff]  ;;  %v26_v1 = vld [vmem:[%s484_s1 + $0x18] sm:$0xff]  ;;  %v23_v2 = vld [vmem:[%s484_s1] sm:$0xff]  ;;  %131 = vmatprep.mubr.f32.mxu0 %v296_v7 }
   0x2   :  { %v188_v3 = vpack.c.bf16 %v26_v1, %v24_v0  ;;  %v25_v4 = vld [vmem:[%s484_s1 + $0x10] sm:$0xff]  ;;  %v28_v5 = vld [vmem:[%s484_s1 + $0x28] sm:$0xff]  ;;  %v30_v6 = vld [vmem:[%s484_s1 + $0x38] sm:$0xff] }
   0x3   :  { %v190_v8 = vpack.c.bf16 %v25_v4, %v23_v2  ;;  %v192_v9 = vpack.c.bf16 %v30_v6, %v28_v5  ;;  %v27_v10 = vld [vmem:[%s484_s1 + $0x20] sm:$0xff]  ;;  %v29_v11 = vld [vmem:[%s484_s1 + $0x30] sm:$0xff]  ;;  %v32_v12 = vld [vmem:[%s484_s1 + $0x48] sm:$0xff] }
   0x4   :  { %189 = vmatprep.subr.bf16.mxu0 %v188_v3  ;;  %v34_v13 = vld [vmem:[%s484_s1 + $0x58] sm:$0xff]  ;;  %v194_v14 = vpack.c.bf16 %v29_v11, %v27_v10  ;;  %v31_v16 = vld [vmem:[%s484_s1 + $0x40] sm:$0xff]  ;;  %v33_v17 = vld [vmem:[%s484_s1 + $0x50] sm:$0xff] }
   0x5   :  { %191 = vmatpush1.bf16.msra.mxu0 %v190_v8  ;;  %v196_v15 = vpack.c.bf16 %v34_v13, %v32_v12  ;;  %v36_v18 = vld [vmem:[%s484_s1 + $0x68] sm:$0xff]  ;;  %v38_v19 = vld [vmem:[%s484_s1 + $0x78] sm:$0xff]  ;;  %v198_v20 = vpack.c.bf16 %v33_v17, %v31_v16  ;;  %v35_v22 = vld [vmem:[%s484_s1 + $0x60] sm:$0xff] }
   0x6   :  { %193 = vmatprep.subr.bf16.mxu0 %v192_v9  ;;  %v200_v21 = vpack.c.bf16 %v38_v19, %v36_v18  ;;  %v37_v23 = vld [vmem:[%s484_s1 + $0x70] sm:$0xff]  ;;  %v40_v24 = vld [vmem:[%s484_s1 + $0x88] sm:$0xff]  ;;  %v42_v25 = vld [vmem:[%s484_s1 + $0x98] sm:$0xff] }
   0x9   :  { %195 = vmatpush1.bf16.msra.mxu0 %v194_v14 }
   0xa   :  { %197 = vmatprep.subr.bf16.mxu0 %v196_v15 }
   0xb   :  { %13 = vsyncpa [#allocation5], 0  ;;  %v202_v26 = vpack.c.bf16 %v37_v23, %v35_v22  ;;  %v204_v27 = vpack.c.bf16 %v42_v25, %v40_v24  ;;  %v39_v28 = vld [vmem:[%s484_s1 + $0x80] sm:$0xff]  ;;  %v41_v29 = vld [vmem:[%s484_s1 + $0x90] sm:$0xff]  ;;  %v57_v50 = vlaneseq  ;;  %s298_s18 = smov [#allocation4]  }
   0xc   :  { %v44_v30 = vld [vmem:[%s484_s1 + $0xa8] sm:$0xff]  ;;  %v46_v31 = vld [vmem:[%s484_s1 + $0xb8] sm:$0xff]  ;;  %v206_v32 = vpack.c.bf16 %v41_v29, %v39_v28  ;;  %v43_v34 = vld [vmem:[%s484_s1 + $0xa0] sm:$0xff]  ;;  %s163_s19 = sshll.u32 %s298_s18, 4  ;;  %s437_s19 = int_to_ptr.vmem [resolvable:$true] %s163_s19 }
   0xd   :  { %199 = vmatpush1.bf16.msra.mxu0 %v198_v20  ;;  %v208_v33 = vpack.c.bf16 %v46_v31, %v44_v30  ;;  %v45_v35 = vld [vmem:[%s484_s1 + $0xb0] sm:$0xff]  ;;  %v48_v36 = vld [vmem:[%s484_s1 + $0xc8] sm:$0xff]  ;;  %v50_v37 = vld [vmem:[%s484_s1 + $0xd8] sm:$0xff]  ;;  %v58_v51 = vshrl.u32 %v57_v50, 7 }
   0xe   :  { %201 = vmatprep.subr.bf16.mxu0 %v200_v21  ;;  %v210_v38 = vpack.c.bf16 %v45_v35, %v43_v34  ;;  %v212_v39 = vpack.c.bf16 %v50_v37, %v48_v36  ;;  %v47_v40 = vld [vmem:[%s484_s1 + $0xc0] sm:$0xff]  ;;  %v49_v41 = vld [vmem:[%s484_s1 + $0xd0] sm:$0xff]  ;;  %v52_v42 = vld [vmem:[%s484_s1 + $0xe8] sm:$0xff] }
   0xf   :  { %v54_v43 = vld [vmem:[%s484_s1 + $0xf8] sm:$0xff]  ;;  %v214_v44 = vpack.c.bf16 %v49_v41, %v47_v40  ;;  %v51_v46 = vld [vmem:[%s484_s1 + $0xe0] sm:$0xff]  ;;  %v53_v47 = vld [vmem:[%s484_s1 + $0xf0] sm:$0xff]  ;;  %v59_v52 = vsub.s32 0, %v58_v51  ;;  %v63_v54 = vsub.s32 1, %v58_v51  ;;  %s297_s1 = smov [#allocation2]  }
  0x10   :  { %v216_v45 = vpack.c.bf16 %v54_v43, %v52_v42  ;;  %v218_v48 = vpack.c.bf16 %v53_v47, %v51_v46  ;;  %v22_v49 = vld [vmem:[%s483_s0] sm:$0xff]  ;;  %s153_s17 = sshll.u32 %s297_s1, 4  ;;  %s154_s17 = int_to_ptr.vmem [resolvable:$true] %s153_s17 }
  0x11   :  { %203 = vmatpush1.bf16.msra.mxu0 %v202_v26  ;;  %v55_v53 = vld [vmem:[%s485_s2] sm:$0x3]  ;;  %s226_s0 = scalar_lea.vmem %s154_s17, 128  ;;  %p231_p1 = scmp.lt.s32.totalorder %s154_s17, %s154_s17 }
  0x12   :  { %205 = vmatprep.subr.bf16.mxu0 %v204_v27  ;;  %v60_v55 = vrot.slane %v55_v53, %v59_v52  ;;  %v64_v56 = vrot.slane %v55_v53, %v63_v54  ;;  %p227_p0 = scmp.ne.s32.totalorder %s154_s17, %s226_s0  ;;  %p232_p2 = scmp.lt.s32.totalorder %s226_s0, %s226_s0 }
  0x14   :  { %p233_p3 = por %p232_p2, %p231_p1 }
  0x15   :  { %207 = vmatpush1.bf16.msra.mxu0 %v206_v32 }
  0x16   :  { %209 = vmatprep.subr.bf16.mxu0 %v208_v33  ;;  %p234_p4 = pnand %p233_p3, %p227_p0 }
  0x19   :  { %211 = vmatpush1.bf16.msra.mxu0 %v210_v38 }
  0x1a   :  { %213 = vmatprep.subr.bf16.mxu0 %v212_v39 }
  0x1d   :  { %215 = vmatpush1.bf16.msra.mxu0 %v214_v44 }
  0x1e   :  { %217 = vmatprep.subr.bf16.mxu0 %v216_v45 }
  0x21   :  { %219 = vmatpush1.bf16.msra.mxu0 %v218_v48 }
  0x24   :  { %132 = vmatmul.mubr.f32.vlgmr.msra.gmra.mrb[0].mxu0 %v22_v49 }
  0xf7   :  { %v133_v57 = vpop.f32.mrb[0].mxu0 }
  0xf8   :  { %v134_v58 = vadd.f32 %v133_v57, %v60_v55  ;;  %v135_v59 = vpop.f32.mrb[1].mxu0 }
  0xf9   :  { %v136_v60 = vadd.f32 %v135_v59, %v64_v56 }
  0xfa   :  { %144 = vst [vmem:[#allocation2] sm:$0xff] %v134_v58 }
  0xfb   :  { %v138_v61 = vmul.f32 0.5, %v136_v60  ;;  %145 = vst [vmem:[#allocation4] sm:$0xff] %v136_v60 }
  0xfc   :  { %237 = shalt.err (!%p234_p4)
}
  0xfd   :  { %s238_s21 = scalar_lea.hbm %s487_s4, 128 }
  0xfe   :  { %p239_p5 = scmp.ne.s32.totalorder %s487_s4, %s238_s21  ;;  %p242_p6 = scmp.lt.u32.totalorder %s238_s21, %s487_s4 }
 0x100   :  { %p244_p7 = pnand %p242_p6, %p239_p5 }
 0x102   :  { %247 = shalt.err (!%p244_p7)
}
 0x103   :  { %156 = dma.vmem_to_hbm [thread:$0]  %s154_s17, 128, %s487_s4, [#allocation3]  }
 0x104   :  { %s248_s28 = scalar_lea.vmem %s437_s19, 128  ;;  %p253_p9 = scmp.lt.s32.totalorder %s437_s19, %s437_s19 }
 0x105   :  { %p249_p8 = scmp.ne.s32.totalorder %s437_s19, %s248_s28  ;;  %p254_p10 = scmp.lt.s32.totalorder %s248_s28, %s248_s28 }
 0x107   :  { %p255_p11 = por %p254_p10, %p253_p9 }
 0x109   :  { %p256_p12 = pnand %p255_p11, %p249_p8 }
 0x10b   :  { %259 = shalt.err (!%p256_p12)
}
 0x10c   :  { %s260_s7 = scalar_lea.hbm %s488_s5, 128 }
 0x10d   :  { %p261_p13 = scmp.ne.s32.totalorder %s488_s5, %s260_s7  ;;  %p264_p0 = scmp.lt.u32.totalorder %s260_s7, %s488_s5 }
 0x10f   :  { %p266_p1 = pnand %p264_p0, %p261_p13 }
 0x111   :  { %269 = shalt.err (!%p266_p1)
}
 0x112   :  { %166 = dma.vmem_to_hbm [thread:$0]  %s437_s19, 128, %s488_s5, [#allocation5]   ;;  %v139_v62 = vmul.f32 1.442695, %v138_v61  ;;  %v141_v63 = vld [vmem:[%s486_s3] sm:$0xff] }
 0x113   :  { %s299_s15 = smov [#allocation6]  }
 0x114   :  { %224 = vpow2.f32 %v139_v62  ;;  %s173_s16 = sshll.u32 %s299_s15, 4  ;;  %s174_s16 = int_to_ptr.vmem [resolvable:$true] %s173_s16 }
 0x115   :  { %s270_s1 = scalar_lea.vmem %s174_s16, 128  ;;  %p275_p3 = scmp.lt.s32.totalorder %s174_s16, %s174_s16 }
 0x116   :  { %p271_p2 = scmp.ne.s32.totalorder %s174_s16, %s270_s1  ;;  %p276_p4 = scmp.lt.s32.totalorder %s270_s1, %s270_s1 }
 0x118   :  { %p277_p5 = por %p276_p4, %p275_p3 }
 0x11a   :  { %p278_p6 = pnand %p277_p5, %p271_p2 }
 0x11e   :  { %v225_v0 = vpop.eup %224 }
 0x11f   :  { %v142_v1 = vmul.f32 %v225_v0, %v141_v63 }
 0x121   :  { %v143_v2 = vadd.f32 %v142_v1, %v134_v58 }
 0x123   :  { %146 = vst [vmem:[#allocation6] sm:$0xff] %v143_v2 }
 0x124   :  { %281 = shalt.err (!%p278_p6)
}
 0x125   :  { %s282_s18 = scalar_lea.hbm %s489_s6, 128 }
 0x126   :  { %p283_p7 = scmp.ne.s32.totalorder %s489_s6, %s282_s18  ;;  %p286_p8 = scmp.lt.u32.totalorder %s282_s18, %s489_s6 }
 0x128   :  { %p288_p9 = pnand %p286_p8, %p283_p7 }
 0x12a   :  { %291 = shalt.err (!%p288_p9)
}
 0x12b   :  { %176 = dma.vmem_to_hbm [thread:$0]  %s174_s16, 128, %s489_s6, [#allocation5]  }
 0x12c   :  { %292 = dma.done.wait [#allocation3], 128  }
 0x12d   :  { %293 = vsyncadd [#allocation3], 4294967168 }
 0x12e   :  { %294 = dma.done.wait [#allocation5], 256  }
 0x12f   :  { %295 = vsyncadd [#allocation5], 4294967040 }
 0x130   :  { %186 = vsyncpa [#allocation3], 1 }
 0x131   :  { %187 = vsyncpa [#allocation5], 1 }

</bundles_post_ra>
